<compile_context>
chip_gen: v7x
topology: tpu7x:2x2x1
jax: 0.10.0
libtpu: 0.0.40
codegen_flags: <defaults>
</compile_context>

<pallas_src>
import math

import jax
import jax.numpy as jnp
from jax.experimental import pallas as pl
from jax.experimental.pallas import tpu as pltpu


def _round_up(x, m):
    return (x + m - 1) // m * m


def _band_weight(w, T, Tp, cout_p):
    """(K, Cin, Cout) conv taps -> dense banded (Tp*Cin, T*cout_p) matrix."""
    K, Cin, Cout = w.shape
    # taps[k, tp, t] == 1  iff  tp == t + k
    taps = jnp.stack(
        [jnp.eye(Tp, T, k=-tap, dtype=w.dtype) for tap in range(K)])   # (K, Tp, T)
    band = jnp.einsum('kpt,kio->pito', taps, w)                        # (Tp, Cin, T, Cout)
    band = jnp.pad(band, ((0, 0), (0, 0), (0, 0), (0, cout_p - Cout)))
    return band.reshape(Tp * Cin, T * cout_p)


def _band_bias(b, T, cout_p):
    Cout = b.shape[0]
    bb = jnp.pad(jnp.broadcast_to(b, (T, Cout)), ((0, 0), (0, cout_p - Cout)))
    return bb.reshape(1, T * cout_p).astype(jnp.float32)


def _temporal_conv_kernel(x_ref, w_ref, b_ref, o_ref):
    # x_ref: (tm, Tp*Cin)   w_ref: (Tp*Cin, 3*wp)   b_ref: (1, 3*wp)   o_ref: (tm, wp)
    wp = o_ref.shape[-1]
    # One fused matmul for conv1/conv2/conv3 over all K taps; f32 accumulate.
    y = jnp.dot(x_ref[...], w_ref[...], preferred_element_type=jnp.float32)
    y = y + b_ref[...]
    # f32 epilogue (v5e VPU/EUP have no bf16); sigmoid's exp lands on the EUP slot.
    q = jax.nn.sigmoid(y[:, wp:2 * wp])
    h = jnp.maximum(y[:, :wp] * q + y[:, 2 * wp:], 0.0)
    o_ref[...] = h.astype(o_ref.dtype)


def temporal_conv(x, w1, b1, w2, b2, w3, b3, *, compute_dtype=None,
                  vmem_budget_bytes=16 * 1024 * 1024, max_tile_rows=512):
    """x: (B, T, N, Cin).  wX: (K, Cin, Cout), bX: (Cout,).
    Returns (B, T, N, Cout), matching PyTorch TemporalConv.forward.
    compute_dtype=jnp.bfloat16 casts x / weights (f32 accumulate) for v6e/v7x."""
    B, T, N, Cin = x.shape
    K, _, Cout = w1.shape
    pad = (K - 1) // 2
    Tp = T + 2 * pad
    M = B * N
    out_dtype = jnp.dtype(x.dtype)

    # ---- lane alignment: pad Cout so the per-conv width T*Cout_p is a multiple of 128.
    lane = 128
    cpad = lane // math.gcd(T, lane)
    cout_p = _round_up(Cout, cpad)
    if cout_p > 2 * Cout and cout_p > Cout + 16:
        cout_p = Cout                 # padding too wasteful; accept a sub-lane split
    wp = T * cout_p                   # per-conv output width on the lane axis
    in_cols = Tp * Cin

    # ---- flatten (B, N) rows, fold in the zero time-halo, lane-flatten the row.
    xr = jnp.transpose(x, (0, 2, 1, 3)).reshape(M, T, Cin)
    xp = jnp.pad(xr, ((0, 0), (pad, pad), (0, 0))).reshape(M, in_cols)

    # ---- fuse 3 convs x K taps into one banded weight / bias.
    w_cat = jnp.concatenate(
        [_band_weight(w, T, Tp, cout_p) for w in (w1, w2, w3)], axis=1)  # (in_cols, 3*wp)
    b_cat = jnp.concatenate(
        [_band_bias(b, T, cout_p) for b in (b1, b2, b3)], axis=1)        # (1, 3*wp)

    if compute_dtype is not None:
        xp = xp.astype(compute_dtype)
        w_cat = w_cat.astype(compute_dtype)

    # ---- tile the row axis; budget sized so x/out double-buffers + the f32 matmul
    #      result stay well inside the v7x 64 MiB (32 MiB scoped) VMEM.
    x_row_bytes = in_cols * jnp.dtype(xp.dtype).itemsize
    o_row_bytes = wp * out_dtype.itemsize
    y_row_bytes = 3 * wp * 4
    bytes_per_row = 2 * x_row_bytes + 2 * o_row_bytes + y_row_bytes
    tm = max(8, min((vmem_budget_bytes // bytes_per_row) // 8 * 8, max_tile_rows))
    # prefer >= 2 grid steps (software pipelining + v7x dual-TC sharding)
    half_rows = _round_up(max((M + 1) // 2, 8), 8)
    tm = min(tm, half_rows)
    M_pad = _round_up(M, tm)
    if M_pad > M:
        xp = jnp.pad(xp, ((0, M_pad - M), (0, 0)))
    grid = (M_pad // tm,)

    cost = pl.CostEstimate(
        flops=2 * M_pad * in_cols * 3 * wp,
        transcendentals=M_pad * wp,
        bytes_accessed=(xp.size * jnp.dtype(xp.dtype).itemsize
                        + w_cat.size * jnp.dtype(w_cat.dtype).itemsize
                        + b_cat.size * 4
                        + M_pad * wp * out_dtype.itemsize),
    )

    out = pl.pallas_call(
        _temporal_conv_kernel,
        out_shape=jax.ShapeDtypeStruct((M_pad, wp), out_dtype),
        grid_spec=pltpu.PrefetchScalarGridSpec(
            num_scalar_prefetch=0,
            grid=grid,
            in_specs=[
                pl.BlockSpec((tm, in_cols), lambda i: (i, 0)),
                pl.BlockSpec((in_cols, 3 * wp), lambda i: (0, 0)),
                pl.BlockSpec((1, 3 * wp), lambda i: (0, 0)),
            ],
            out_specs=pl.BlockSpec((tm, wp), lambda i: (i, 0)),
        ),
        compiler_params=pltpu.CompilerParams(
            dimension_semantics=("parallel",),
            vmem_limit_bytes=48 * 1024 * 1024,
        ),
        cost_estimate=cost,
    )(xp, w_cat, b_cat)

    # glue: (M_pad, T*cout_p) -> (B, N, T, Cout) -> (B, T, N, Cout)
    out = out[:M].reshape(B, N, T, cout_p)[..., :Cout]
    return jnp.transpose(out, (0, 2, 1, 3))


def _reference(x, w1, b1, w2, b2, w3, b3):
    """Pure-JAX reference of the same math (cross-correlation along time, (1,K))."""
    B, T, N, Cin = x.shape
    K, _, Cout = w1.shape
    pad = (K - 1) // 2
    xp = jnp.pad(x, ((0, 0), (pad, pad), (0, 0), (0, 0)))

    def conv(w, b):
        acc = jnp.zeros((B, T, N, Cout), jnp.float32)
        for k in range(K):
            acc = acc + jnp.einsum('btnc,co->btno', xp[:, k:k + T], w[k])
        return acc + b

    p = conv(w1, b1)
    q = jax.nn.sigmoid(conv(w2, b2))
    return jnp.maximum(p * q + conv(w3, b3), 0.0)


if __name__ == "__main__":
    B, T, N, Cin, Cout, K = 2, 8, 16, 4, 8, 3

    key = jax.random.PRNGKey(0)
    kx, k1, k2, k3, kb1, kb2, kb3 = jax.random.split(key, 7)

    x = jax.random.normal(kx, (B, T, N, Cin), dtype=jnp.float32)
    scale = 1.0 / (Cin * K) ** 0.5
    w1 = scale * jax.random.normal(k1, (K, Cin, Cout), dtype=jnp.float32)
    w2 = scale * jax.random.normal(k2, (K, Cin, Cout), dtype=jnp.float32)
    w3 = scale * jax.random.normal(k3, (K, Cin, Cout), dtype=jnp.float32)
    b1 = scale * jax.random.normal(kb1, (Cout,), dtype=jnp.float32)
    b2 = scale * jax.random.normal(kb2, (Cout,), dtype=jnp.float32)
    b3 = scale * jax.random.normal(kb3, (Cout,), dtype=jnp.float32)

    ref = _reference(x, w1, b1, w2, b2, w3, b3)

    # f32 path (exact numerics, v5e-friendly epilogue).
    out = jax.block_until_ready(temporal_conv(x, w1, b1, w2, b2, w3, b3))
    assert out.shape == (B, T, N, Cout)
    assert jnp.allclose(out, ref, atol=1e-5, rtol=1e-5), "f32 kernel mismatch vs reference"

    # bf16 input/weight path (v6e/v7x: halved HBM traffic, bf16 MXU), f32 accumulate.
    out_bf16 = jax.block_until_ready(
        temporal_conv(x, w1, b1, w2, b2, w3, b3, compute_dtype=jnp.bfloat16))
    assert out_bf16.shape == (B, T, N, Cout)
    assert jnp.allclose(out_bf16, ref, atol=1e-1, rtol=1e-1), "bf16 kernel mismatch vs reference"

    print("KERNEL_OK")
</pallas_src>

<mosaic_0001>
module attributes {stable_mosaic.version = 11 : i64} {
  func.func @_temporal_conv_kernel(%arg0: i32, %arg1: memref<16x40xf32, #tpu.memory_space<vmem>>, %arg2: memref<40x384xf32, #tpu.memory_space<vmem>>, %arg3: memref<1x384xf32, #tpu.memory_space<vmem>>, %arg4: memref<16x128xf32, #tpu.memory_space<vmem>>) attributes {dimension_semantics = [#tpu.dimension_semantics<parallel>], iteration_bounds = array<i64: 2>, scalar_prefetch = 0 : i64, scratch_operands = 0 : i64, tpu.core_type = #tpu.core_type<tc>, window_params = [{transform_indices = @transform_0, window_bounds = array<i64: 16, 40>}, {pipeline_mode = #tpu.pipeline_mode<synchronous>, transform_indices = @transform_1, window_bounds = array<i64: 40, 384>}, {pipeline_mode = #tpu.pipeline_mode<synchronous>, transform_indices = @transform_2, window_bounds = array<i64: 1, 384>}, {transform_indices = @transform_3, window_bounds = array<i64: 16, 128>}]} {
    %c0 = arith.constant 0 : index
    %c0_0 = arith.constant 0 : index
    %0 = vector.load %arg1[%c0, %c0_0] : memref<16x40xf32, #tpu.memory_space<vmem>>, vector<16x40xf32>
    %c0_1 = arith.constant 0 : index
    %c0_2 = arith.constant 0 : index
    %1 = vector.load %arg2[%c0_1, %c0_2] : memref<40x384xf32, #tpu.memory_space<vmem>>, vector<40x384xf32>
    %cst = arith.constant dense<0.000000e+00> : vector<16x384xf32>
    %2 = tpu.matmul %0, %1, %cst {dimension_numbers = #tpu.dot_dimension_numbers<[1], [0], [0], [1], [0, 0, 1, 1], [], []>} : vector<16x40xf32>, vector<40x384xf32>, vector<16x384xf32> -> vector<16x384xf32>
    %c0_3 = arith.constant 0 : index
    %c0_4 = arith.constant 0 : index
    %3 = vector.load %arg3[%c0_3, %c0_4] : memref<1x384xf32, #tpu.memory_space<vmem>>, vector<1x384xf32>
    %4 = vector.broadcast %3 : vector<1x384xf32> to vector<16x384xf32>
    %5 = arith.addf %2, %4 : vector<16x384xf32>
    %6 = vector.extract_strided_slice %5 {offsets = [0, 128], sizes = [16, 128], strides = [1, 1]} : vector<16x384xf32> to vector<16x128xf32>
    %7 = arith.negf %6 : vector<16x128xf32>
    %8 = math.exp %7 : vector<16x128xf32>
    %cst_5 = arith.constant 1.000000e+00 : f32
    %9 = vector.broadcast %cst_5 : f32 to vector<16x128xf32>
    %10 = arith.addf %9, %8 : vector<16x128xf32>
    %11 = arith.divf %9, %10 : vector<16x128xf32>
    %12 = vector.extract_strided_slice %5 {offsets = [0, 0], sizes = [16, 128], strides = [1, 1]} : vector<16x384xf32> to vector<16x128xf32>
    %13 = arith.mulf %12, %11 : vector<16x128xf32>
    %14 = vector.extract_strided_slice %5 {offsets = [0, 256], sizes = [16, 128], strides = [1, 1]} : vector<16x384xf32> to vector<16x128xf32>
    %15 = arith.addf %13, %14 : vector<16x128xf32>
    %cst_6 = arith.constant 0.000000e+00 : f32
    %16 = vector.broadcast %cst_6 : f32 to vector<16x128xf32>
    %17 = arith.maximumf %15, %16 : vector<16x128xf32>
    %c0_7 = arith.constant 0 : index
    %c0_8 = arith.constant 0 : index
    %18 = vector.load %arg4[%c0_7, %c0_8] : memref<16x128xf32, #tpu.memory_space<vmem>>, vector<16x128xf32>
    tpu.vector_store %arg4[%c0_7, %c0_8], %17 {strides = array<i32>} : memref<16x128xf32, #tpu.memory_space<vmem>>, vector<16x128xf32>,
    return
  }
  func.func @transform_0(%arg0: i32) -> (i32, i32) {
    %c0_i32 = arith.constant 0 : i32
    %c0_i32_0 = arith.constant 0 : i32
    return %arg0, %c0_i32 : i32, i32
  }
  func.func @transform_1(%arg0: i32) -> (i32, i32) {
    %c0_i32 = arith.constant 0 : i32
    %c0_i32_0 = arith.constant 0 : i32
    %c0_i32_1 = arith.constant 0 : i32
    return %c0_i32, %c0_i32_0 : i32, i32
  }
  func.func @transform_2(%arg0: i32) -> (i32, i32) {
    %c0_i32 = arith.constant 0 : i32
    %c0_i32_0 = arith.constant 0 : i32
    %c0_i32_1 = arith.constant 0 : i32
    return %c0_i32, %c0_i32_0 : i32, i32
  }
  func.func @transform_3(%arg0: i32) -> (i32, i32) {
    %c0_i32 = arith.constant 0 : i32
    %c0_i32_0 = arith.constant 0 : i32
    return %arg0, %c0_i32 : i32, i32
  }
}

</mosaic_0001>

<bundles_post_ra>
// kernel: tpu_custom_call.1
= control target key start
LH: loop header
LB: loop body
LE: loop exit
PB: predicated region body
PF: predicated region fallthrough
CT: control target
= control target key end

     0   :  { %8 = vsyncpa [#allocation3], 0  ;;  %s1024_s0 = inlined_call_operand.hbm [shape: f32[32,40], index: 0, kind: input, shape index: {}]   ;;  %s1025_s1 = inlined_call_operand.hbm [shape: f32[40,384], index: 1, kind: input, shape index: {}]   ;;  %s1026_s2 = inlined_call_operand.vmem [shape: f32[1,384], index: 2, kind: input, shape index: {}]   ;;  %s1027_s3 = inlined_call_operand.hbm [shape: f32[32,128], index: 3, kind: output, shape index: {}]  }
   0x1   :  { %10 = vsyncpa [#allocation3 + $0x1], 0 }
   0x2   :  { %11 = vsyncpa [#allocation6], 0 }
   0x3   :  { %12 = vsyncpa [#allocation4], 0 }
   0x4   :  { %14 = vsyncpa [#allocation4 + $0x1], 0  ;;  %s808_s12 = smov 0   ;;  %s810_s13 = smov 0  }
   0x5   :  { %s812_s14 = smov 0   ;;  %s814_s15 = smov 0  }
   0x6 LB: > { %s829_s16 = sadd.s32 4294967295, %s776_s15   ;;  %s516_s17 = sadd.s32 4294967294, %s776_s15   ;;  %s776_s15 = sphi %s814_s15, %s1047_s15   ;;  %s772_s14 = sphi %s812_s14, %s1046_s14   ;;  %s768_s13 = sphi %s810_s13, %s1045_s13   ;;  %s764_s12 = sphi %s808_s12, %s1044_s12  }
   0x7   : > { %p40_p0 = scmp.ne.s32.totalorder %s768_s13, %s764_s12  ;;  %p1028_p1 = scmp.eq.s32.totalorder %s829_s16, 0 }
   0x8   : > { %p112_p3 = scmp.eq.s32.totalorder %s516_s17, 1  ;;  %p517_p5 = scmp.ge.s32.totalorder %s776_s15, 1 }
   0x9   : > { %p838_p4 = por %p1028_p1, %p40_p0  ;;  %p119_p7 = scmp.lt.s32.totalorder %s776_s15, 3 }
   0xa   : > { %p843_p6 = por %p112_p3, %p40_p0  ;;  %s778_s21 = smov [#allocation5]  }
   0xb   : > { %s1031_s18 = scalar_select %p838_p4, 1, 0 }
   0xc   : > { %s1032_s19 = scalar_select %p843_p6, 1, 0 }
   0xd   : > { %p848_p8 = pnand %p517_p5, %p119_p7  ;;  %s131_s22 = sshll.u32 %s778_s21, 4  ;;  %s852_s22 = int_to_ptr.vmem [resolvable:$true] %s131_s22 }
   0xe   : > { %s864_s24 = sadd.s32 1, %s776_s15   ;;  %s27_s25 = sadd.s32 1, %s772_s14 }
   0xf   : > { %s1033_s20 = scalar_select %p848_p8, 1, 0 }
  0x10   : > { %p584_p9 = pneg %p848_p8  ;;  %s24_s26 = ssub.s32 %s776_s15, %s864_s24 }
  0x11   : > { %s648_s29 = scalar_lea.hbm %s1025_s1, 1920 }
  0x12   : > { %p859_p11 = pnand %p584_p9, %p1028_p1  ;;  %p649_p12 = scmp.ne.s32.totalorder %s1025_s1, %s648_s29 }
  0x13   : > { %p655_p5 = scmp.lt.u32.totalorder %s648_s29, %s1025_s1 }
  0x14   : > { %p650_p13 = pneg %p859_p11 }
  0x16   : > { %p651_p0 = pnand %p650_p13, %p649_p12 }
  0x18   : > { %p652_p3 = pneg %p651_p0 }
  0x1a   : > { %p657_p7 = pnand %p655_p5, %p652_p3 }
  0x1c   : > { %660 = shalt.err (!%p657_p7)
}
  0x1d   : > { %s661_s7 = scalar_lea.vmem %s852_s22, 1920  ;;  %p669_p2 = scmp.lt.s32.totalorder %s852_s22, %s852_s22 }
  0x1e   : > { %p662_p9 = scmp.ne.s32.totalorder %s852_s22, %s661_s7  ;;  %p670_p6 = scmp.lt.s32.totalorder %s661_s7, %s661_s7 }
  0x20   : > { %p664_p10 = pnand %p662_p9, %p650_p13  ;;  %p671_p4 = por %p670_p6, %p669_p2 }
  0x22   : > { %p665_p1 = pneg %p664_p10 }
  0x24   : > { %p672_p8 = pnand %p671_p4, %p665_p1 }
  0x26   : > { %675 = shalt.err (!%p672_p8)
}
  0x27   : > { %s779_s8 = smov 384   ;;  %s780_s9 = smov 24  }
  0x28   : > { %587 = dma.hbm_to_vmem [thread:$0]  (!%p859_p11), %s1025_s1, 1920, %s852_s22, [#allocation6], %s779_s8, %s779_s8, %s780_s9  }
  0x29   : > { %p25_p2 = scmp.eq.s32.totalorder %s24_s26, 0  ;;  %p34_p1 = scmp.ne.s32.totalorder %s772_s14, %s768_s13 }
  0x2a   : > { %p35_p4 = scmp.eq.s32.totalorder %s776_s15, 0  ;;  %p597_p6 = scmp.lt.s32.totalorder %s776_s15, 2 }
  0x2b   : > { %s895_s17 = scalar_select %p25_p2, %s772_s14, %s27_s25  }
  0x2c   : > { %p36_p8 = por %p35_p4, %p34_p1  ;;  %p1035_p10 = scmp.eq.s32.totalorder %s829_s16, 1 }
  0x2d   : > { %s148_s27 = sand.u32 1, %s772_s14   ;;  %s538_s28 = sshll.u32 %s776_s15, 8 }
  0x2e   : > { %p899_p12 = por %p1035_p10, %p34_p1  ;;  %s520_s29 = sshll.u32 %s148_s27, 4 }
  0x2f   : > { %s908_s4 = scalar_lea.hbm %s1024_s0, %s538_s28  ;;  %s152_s22 = scalar_lea.vmem [#allocation2], %s520_s29 }
  0x30   : > { %s159_s25 = sshll.u32 %s152_s22, 4  ;;  %p910_p11 = pnand %p597_p6, %p36_p8  ;;  %s914_s25 = int_to_ptr.vmem [resolvable:$true] %s159_s25 }
  0x31   : > { %s916_s5 = scalar_lea.sflag [#allocation3], %s148_s27  ;;  %s676_s6 = scalar_lea.hbm %s908_s4, 256 }
  0x32   : > { %p677_p13 = scmp.ne.s32.totalorder %s908_s4, %s676_s6  ;;  %p678_p0 = pneg %p910_p11 }
  0x33   : > { %s681_s9 = scalar_lea.hbm %s1024_s0, 512  ;;  %p682_p7 = scmp.lt.u32.totalorder %s908_s4, %s1024_s0 }
  0x34   : > { %p679_p3 = pnand %p678_p0, %p677_p13  ;;  %p683_p9 = scmp.lt.u32.totalorder %s681_s9, %s676_s6 }
  0x35   : > { %p685_p1 = scmp.lt.u32.totalorder %s676_s6, %s908_s4 }
  0x36   : > { %p680_p5 = pneg %p679_p3  ;;  %p684_p2 = por %p683_p9, %p682_p7 }
  0x38   : > { %p686_p4 = por %p685_p1, %p684_p2 }
  0x3a   : > { %p687_p6 = pnand %p686_p4, %p680_p5 }
  0x3c   : > { %690 = shalt.err (!%p687_p6)
}
  0x3d   : > { %s691_s27 = scalar_lea.vmem %s914_s25, 256  ;;  %s781_s28 = smov [#allocation2]  }
  0x3e   : > { %p692_p8 = scmp.ne.s32.totalorder %s914_s25, %s691_s27  ;;  %s696_s29 = sshll.u32 %s781_s28, 4  ;;  %s697_s29 = int_to_ptr.vmem [resolvable:$false] %s696_s29 }
  0x3f   : > { %s698_s23 = scalar_lea.vmem %s697_s29, 512  ;;  %p699_p3 = scmp.lt.s32.totalorder %s914_s25, %s697_s29 }
  0x40   : > { %p694_p10 = pnand %p692_p8, %p678_p0  ;;  %p700_p7 = scmp.lt.s32.totalorder %s698_s23, %s691_s27 }
  0x42   : > { %p695_p13 = pneg %p694_p10  ;;  %p701_p9 = por %p700_p7, %p699_p3 }
  0x44   : > { %p702_p2 = pnand %p701_p9, %p695_p13 }
  0x46   : > { %705 = shalt.err (!%p702_p2)
}
  0x47   : > { %s782_s30 = smov 128   ;;  %s783_s22 = smov 8  }
  0x48   : > { %591 = dma.hbm_to_vmem [thread:$0]  (!%p910_p11), %s908_s4, 256, %s914_s25, %s916_s5, %s782_s30, %s782_s30, %s783_s22  }
  0x49   : > { %p1038_p0 = scmp.ne.s32.totalorder %s1033_s20, 0 }
  0x4a   : > { %s947_s6 = sand.u32 (!%p1038_p0), 1, %s768_s13   ;;  %p1039_p5 = scmp.ne.s32.totalorder (!%p1038_p0), %s1031_s18, 0 }
  0x4b   : > { %171 = sbr.rel (%p1038_p0) target bundleno = 365 (0x16d), region = 32  ;;  %s524_s7 = sshll.u32 (!%p1038_p0), %s947_s6, 4 }
  0x4c   : > { %s174_s8 = scalar_lea.sflag (!%p1038_p0), [#allocation3], %s947_s6  ;;  %s953_s9 = scalar_lea.vmem (!%p1038_p0), [#allocation2], %s524_s7 }
  0x52   : > { %751 = dma.done.wait (%p1039_p5), %s174_s8, 256  }
  0x53   : > { %753 = vsyncadd (%p1039_p5), %s174_s8, 4294967040  ;;  %p1040_p11 = scmp.eq.s32.totalorder %s829_s16, 0 }
  0x55   : > { %755 = dma.done.wait (%p1040_p11), [#allocation6], 1920   ;;  %p1041_p1 = pmov %p1040_p11 }
  0x56   : > { %v784_v0 = vmov 0.0   ;;  %v209_v1 = vld [vmem:[#allocation5 + $0x8] sm:$0xff]  ;;  %v212_v2 = vld [vmem:[#allocation5 + $0x20] sm:$0xff]  ;;  %v211_v5 = vld [vmem:[#allocation5 + $0x18] sm:$0xff]  ;;  %vm240_vm0 = vcmask 326656   ;;  %v225_v24 = vlaneseq  ;;  %s203_s4 = scalar_lea.vmem [#allocation7], %s524_s7 }
  0x57   : > { %757 = vsyncadd (%p1041_p1), [#allocation6], 4294965376  ;;  %311 = vmatprep.mubr.f32.mxu0 %v784_v0  ;;  %v208_v3 = vld [vmem:[#allocation5] sm:$0xff]  ;;  %v560_v4 = vpack.c.bf16 %v212_v2, %v209_v1  ;;  %v215_v6 = vld [vmem:[#allocation5 + $0x38] sm:$0xff]  ;;  %s433_s25 = sshll.u32 %s203_s4, 4  ;;  %s539_s26 = sshll.u32 %s829_s16, 8  ;;  %s975_s25 = int_to_ptr.vmem [resolvable:$true] %s433_s25 }
  0x58   : > { %v218_v7 = vld [vmem:[#allocation5 + $0x50] sm:$0xff]  ;;  %v562_v8 = vpack.c.bf16 %v211_v5, %v208_v3  ;;  %v217_v11 = vld [vmem:[#allocation5 + $0x48] sm:$0xff]  ;;  %v216_v16 = vld [vmem:[#allocation5 + $0x40] sm:$0xff]  ;;  %v226_v25 = vshrl.u32 %v225_v24, 7  ;;  %s980_s11 = scalar_lea.hbm %s1027_s3, %s539_s26  ;;  %s420_s27 = scalar_lea.sflag [#allocation4], %s947_s6 }
  0x59   : > { %v564_v9 = vpack.c.bf16 %v218_v7, %v215_v6  ;;  %v214_v10 = vld [vmem:[#allocation5 + $0x30] sm:$0xff]  ;;  %561 = vmatprep.subr.bf16.mxu0 %v560_v4  ;;  %v213_v15 = vld [vmem:[#allocation5 + $0x28] sm:$0xff]  ;;  %v219_v18 = vld [vmem:[#allocation5 + $0x58] sm:$0xff]  ;;  %s706_s28 = scalar_lea.vmem %s975_s25, 256  ;;  %s785_s16 = smov [#allocation7]  }
  0x5a   : > { %v206_v12 = vld [vmem:[%s953_s9] sm:$0xff]  ;;  %563 = vmatpush1.bf16.msra.mxu0 %v562_v8  ;;  %v566_v13 = vpack.c.bf16 %v217_v11, %v214_v10  ;;  %v221_v19 = vld [vmem:[#allocation5 + $0x68] sm:$0xff]  ;;  %v572_v20 = vpack.c.bf16 %v219_v18, %v216_v16  ;;  %v231_v26 = vsub.s32 1, %v226_v25  ;;  %v227_v42 = vsub.s32 0, %v226_v25  ;;  %p707_p4 = scmp.ne.s32.totalorder %s975_s25, %s706_s28  ;;  %s710_s29 = sshll.u32 %s785_s16, 4  ;;  %s711_s29 = int_to_ptr.vmem [resolvable:$false] %s710_s29 }
  0x5b   : > { %v210_v14 = vld [vmem:[#allocation5 + $0x10] sm:$0xff]  ;;  %557 = vmatprep.mubr.msk.f32.mxu1 %vm240_vm0, %v206_v12  ;;  %565 = vmatprep.subr.bf16.mxu0 %v564_v9  ;;  %v220_v21 = vld [vmem:[#allocation5 + $0x60] sm:$0xff]  ;;  %v207_v23 = vld [vmem:[%s953_s9 + $0x8] sm:$0xff]  ;;  %v235_v43 = vsub.s32 2, %v226_v25  ;;  %s712_s23 = scalar_lea.vmem %s711_s29, 512  ;;  %p713_p10 = scmp.lt.s32.totalorder %s975_s25, %s711_s29 }
  0x5c   : > { %v568_v17 = vpack.c.bf16 %v213_v15, %v210_v14  ;;  %v222_v22 = vld [vmem:[#allocation5 + $0x70] sm:$0xff]  ;;  %v223_v27 = vld [vmem:[%s1026_s2] sm:$0x7]  ;;  %p708_p6 = pnand %p707_p4, %p899_p12  ;;  %p714_p13 = scmp.lt.s32.totalorder %s712_s23, %s706_s28 }
  0x5d   : > { %v232_v28 = vrot.slane %v223_v27, %v231_v26  ;;  %v228_v45 = vrot.slane %v223_v27, %v227_v42  ;;  %v236_v46 = vrot.slane %v223_v27, %v235_v43 }
  0x5e   : > { %569 = vmatprep.subr.bf16.mxu1 %v568_v17  ;;  %567 = vmatpush1.bf16.msra.mxu0 %v566_v13  ;;  %p709_p8 = pneg %p708_p6  ;;  %p715_p3 = por %p714_p13, %p713_p10 }
  0x5f   : > { %571 = vmatpush3.bf16.msra.mxu1 %v568_v17  ;;  %255 = vmatprep.subr.mxu0 %v221_v19 }
  0x60   : > { %573 = vmatprep.subr.bf16.mxu1 %v572_v20  ;;  %p716_p7 = pnand %p715_p3, %p709_p8 }
  0x62   : > { %256 = vmatpush1.msra.mxu0 %v220_v21 }
  0x63   : > { %575 = vmatpush3.bf16.msra.mxu1 %v572_v20  ;;  %527 = vmatmul.mubr.msk.f32.vlgmr.msra.gmra.mrb[0].mxu0 %vm240_vm0, %v206_v12 }
  0x64   : > { %555 = vmatprep.subr.mxu1 %v222_v22  ;;  %317 = vmatprep.mubr.f32.mxu0 %v784_v0 }
  0x67   : > { %556 = vmatpush3.msra.mxu1 %v222_v22  ;;  %528 = vmatmul.mubr.msk.f32.gmra.mrb[2].mxu0 %vm240_vm0, %v207_v23 }
  0x68   : > { %558 = vmatmul.mubr.msk.f32.vlgmr.msra.gmra.mrb[0].mxu1 %vm240_vm0, %v207_v23 }
 0x136   : > { %v313_v29 = vpop.f32.mrb[0].mxu0 }
 0x137   : > { %v315_v30 = vpop.f32.mrb[1].mxu0  ;;  %v314_v47 = vadd.f32 %v313_v29, %v228_v45 }
 0x138   : > { %v316_v31 = vadd.f32 %v315_v30, %v232_v28 }
 0x13a   : > { %v531_v32 = vmul.f32 -1.442695, %v316_v31  ;;  %v319_v33 = vpop.f32.mrb[2].mxu0 }
 0x13b   : > { %v559_v34 = vpop.f32.mrb[0].mxu1  ;;  %v321_v35 = vpop.f32.mrb[3].mxu0  ;;  %v320_v51 = vadd.f32 %v319_v33, %v228_v45 }
 0x13c   : > { %v390_v36 = vpop.f32.mrb[1].mxu1  ;;  %640 = vpow2.f32 %v531_v32  ;;  %v322_v37 = vadd.f32 %v321_v35, %v232_v28  ;;  %v396_v52 = vadd.f32 %v559_v34, %v236_v46 }
 0x13d   : > { %v391_v48 = vadd.f32 %v390_v36, %v236_v46 }
 0x13e   : > { %v532_v38 = vmul.f32 -1.442695, %v322_v37 }
 0x140   : > { %642 = vpow2.f32 %v532_v38 }
 0x146   : > { %v641_v39 = vpop.eup %640 }
 0x147   : > { %v405_v40 = vadd.f32 1.0, %v641_v39 }
 0x149   : > { %644 = vrcp.f32 %v405_v40 }
 0x14a   : > { %v643_v41 = vpop.eup %642 }
 0x14b   : > { %v406_v44 = vadd.f32 1.0, %v643_v41 }
 0x14d   : > { %646 = vrcp.f32 %v406_v44 }
 0x153   : > { %v645_v49 = vpop.eup %644 }
 0x154   : > { %v411_v50 = vmul.f32 %v645_v49, %v314_v47 }
 0x156   : > { %v413_v53 = vadd.f32 %v411_v50, %v391_v48 }
 0x157   : > { %v647_v54 = vpop.eup %646 }
 0x158   : > { %v412_v55 = vmul.f32 %v647_v54, %v320_v51  ;;  %v415_v56 = vmax.f32 %v413_v53, 0.0 }
 0x15a   : > { %v414_v57 = vadd.f32 %v412_v55, %v396_v52  ;;  %417 = vst [vmem:[%s203_s4] sm:$0xff] %v415_v56 }
 0x15c   : > { %v416_v58 = vmax.f32 %v414_v57, 0.0 }
 0x15e   : > { %418 = vst [vmem:[%s203_s4 + $0x8] sm:$0xff] %v416_v58 }
 0x15f   : > { %719 = shalt.err (!%p716_p7)
}
 0x160   : > { %s720_s30 = scalar_lea.hbm %s980_s11, 256  ;;  %s724_s8 = scalar_lea.hbm %s1027_s3, 512 }
 0x161   : > { %p721_p9 = scmp.ne.s32.totalorder %s980_s11, %s720_s30  ;;  %p725_p5 = scmp.lt.u32.totalorder %s980_s11, %s1027_s3 }
 0x162   : > { %p726_p11 = scmp.lt.u32.totalorder %s724_s8, %s720_s30  ;;  %p728_p4 = scmp.lt.u32.totalorder %s720_s30, %s980_s11 }
 0x163   : > { %p722_p2 = pnand %p721_p9, %p899_p12 }
 0x164   : > { %p727_p1 = por %p726_p11, %p725_p5 }
 0x165   : > { %p723_p0 = pneg %p722_p2 }
 0x166   : > { %p729_p6 = por %p728_p4, %p727_p1 }
 0x168   : > { %p730_p8 = pnand %p729_p6, %p723_p0 }
 0x16a   : > { %733 = shalt.err (!%p730_p8)
}
 0x16b   : > { %s786_s20 = smov 128   ;;  %s787_s4 = smov 8  }
 0x16c   : > { %582 = dma.vmem_to_hbm [thread:$0]  (%p899_p12), %s975_s25, 256, %s980_s11, %s420_s27, %s786_s20, %s786_s20, %s787_s4  }
 0x16d PF: > { %s448_s26 = sand.u32 1, %s764_s12   ;;  %p1042_p10 = scmp.ne.s32.totalorder %s1032_s19, 0 }
 0x16e   : > { %p1043_p13 = scmp.ge.s32.totalorder %s776_s15, 2  ;;  %s449_s5 = scalar_lea.sflag [#allocation4], %s448_s26 }
 0x170   : > { %p593_p3 = pnand %p1043_p13, %p1042_p10 }
 0x172   : > { %759 = dma.done.wait (!%p593_p3), %s449_s5, 256  }
 0x173   : > { %761 = vsyncadd (!%p593_p3), %s449_s5, 4294967040  ;;  %p17_p7 = scmp.ge.s32.totalorder %s864_s24, 4   ;;  %s1044_s12 = smov %s768_s13 }
 0x174   : > { %s1045_s13 = smov %s772_s14  ;;  %s1046_s14 = smov %s895_s17 }
 0x175   : > { %s1047_s15 = smov %s864_s24  ;;  %19 = sbr.rel (!%p17_p7) target bundleno = 6 (0x6), region = 81 }
 0x17c   :  { %454 = vsyncpa [#allocation3], 1 }
 0x17d   :  { %456 = vsyncpa [#allocation3 + $0x1], 1 }
 0x17e   :  { %457 = vsyncpa [#allocation6], 1 }
 0x17f   :  { %458 = vsyncpa [#allocation4], 1 }
 0x180   :  { %460 = vsyncpa [#allocation4 + $0x1], 1 }

</bundles_post_ra>
